<compile_context>
chip_gen: v6e
topology: v6e:2x2x1
jax: 0.10.0
libtpu: 0.0.40
codegen_flags: <defaults>
</compile_context>

<pallas_src>
import math

import jax
import jax.numpy as jnp
from jax.experimental import pallas as pl
from jax.experimental.pallas import tpu as pltpu

D = 6                 # latent dim
K = 2                 # number of (shared-parameter) MAF flows
H = 8                 # hidden width of the MAF per-dimension conditioner
IN_DIM = 12           # data dim (encoder input / decoder output)
FH = (D - 1) * H      # fused conditioner hidden width = 40

# --- row offsets inside the packed parameter blob (all multiples of 8) ---
ROW_EW, ROW_EB = 0, 16        # folded encoder  (12,12), (1,12)
ROW_FW1, ROW_FB1 = 24, 32     # fused flow L1   (6,40),  (1,40)
ROW_FW2, ROW_FB2 = 40, 80     # fused flow L2   (40,40), (1,40)  (block-diagonal)
ROW_FW3, ROW_FB3 = 88, 128    # fused flow L3   (40,12), (1,12)  (mu | alpha)
ROW_DW, ROW_DB = 136, 144     # folded decoder  (6,12),  (1,12)
ROW_REV = 152                 # (6,6) lane-reversal permutation matrix
PBLOB_SHAPE = (160, 128)


def vae_nf_kernel(x_ref, noise_ref, p_ref, xprime_ref, kl_ref):
    def seg(row, nrows, ncols):
        return p_ref[pl.ds(row, nrows), pl.ds(0, ncols)]

    ew = seg(ROW_EW, IN_DIM, 2 * D)
    eb = seg(ROW_EB, 1, 2 * D)
    fw1 = seg(ROW_FW1, D, FH)
    fb1 = seg(ROW_FB1, 1, FH)
    fw2 = seg(ROW_FW2, FH, FH)
    fb2 = seg(ROW_FB2, 1, FH)
    fw3 = seg(ROW_FW3, FH, 2 * D)
    fb3 = seg(ROW_FB3, 1, 2 * D)
    dw = seg(ROW_DW, D, IN_DIM)
    db = seg(ROW_DB, 1, IN_DIM)
    rev = seg(ROW_REV, D, D)

    x = x_ref[...]
    B = x.shape[0]

    # ---------------- encoder (4 Linear + identity activations, folded) -------
    enc = jnp.dot(x, ew, preferred_element_type=jnp.float32) + eb        # (B, 2D)
    mu = enc[:, :D]
    log_var = enc[:, D:2 * D]
    sigma = jnp.exp(0.5 * log_var)
    z = mu + sigma * noise_ref[...]

    # ---------------- K MAF flows (shared params), fused conditioners --------
    cur = z
    sum_ladj = jnp.zeros((B, 1), jnp.float32)
    for _ in range(K):
        # fw1 rows >= j are zero within each conditioner block -> exact
        # autoregressive masking; fw2 is block-diagonal per conditioner.
        h = jnp.tanh(jnp.dot(cur, fw1, preferred_element_type=jnp.float32) + fb1)
        h = jnp.tanh(jnp.dot(h, fw2, preferred_element_type=jnp.float32) + fb2)
        out = jnp.dot(h, fw3, preferred_element_type=jnp.float32) + fb3  # (B, 2D)
        mu_f = out[:, :D]                 # column 0 = initial_param mu0
        alpha_f = out[:, D:2 * D]         # column 0 = initial_param alpha0
        z_pre = (cur - mu_f) * jnp.exp(-alpha_f)
        sum_ladj = sum_ladj - jnp.sum(alpha_f, axis=1, keepdims=True)
        # MAF returns z.flip(dims=(1,)) -> lane reversal via (D,D) permutation matmul
        cur = jnp.dot(z_pre, rev, preferred_element_type=jnp.float32)

    # ---------------- KL divergence ----------------
    kl_sum = jnp.sum(1.0 + log_var - mu * mu - jnp.exp(log_var), keepdims=True)  # (1,1)
    ladj_mean = jnp.mean(sum_ladj, keepdims=True)                                # (1,1)
    kl_ref[...] = (-0.5 * kl_sum) / B - ladj_mean

    # ---------------- decoder (folded) ----------------
    xprime_ref[...] = jnp.dot(cur, dw, preferred_element_type=jnp.float32) + db


def init_params(key):
    """Generates PyTorch-style per-layer params, folds/fuses them on the host,
    and packs everything into a single (160, 128) f32 blob."""
    keys = iter(jax.random.split(key, 64))

    def linear(fan_in, fan_out):
        # PyTorch nn.Linear-style uniform(-1/sqrt(fan_in), 1/sqrt(fan_in)) init.
        bound = 1.0 / math.sqrt(fan_in)
        w = jax.random.uniform(next(keys), (fan_in, fan_out), jnp.float32, -bound, bound)
        b = jax.random.uniform(next(keys), (1, fan_out), jnp.float32, -bound, bound)
        return w, b

    enc = [linear(IN_DIM, 50), linear(50, 30), linear(30, 20), linear(20, 2 * D)]
    dec = [linear(D, 20), linear(20, 30), linear(30, 50), linear(50, IN_DIM)]

    def fold(layers):
        # LeakyReLU(True) == identity -> the MLP is a single affine map.
        w, b = layers[0]
        for w2, b2 in layers[1:]:
            w = w @ w2
            b = b @ w2 + b2
        return w, b

    ew, eb = fold(enc)          # (12, 2D), (1, 2D)
    dw, db = fold(dec)          # (D, 12),  (1, 12)

    # ---- MAF flow parameters (one shared set for all K flows), fused ----
    p01 = jax.random.uniform(next(keys), (2,), jnp.float32, -0.5, 0.5)  # (mu0, alpha0)
    fw1 = jnp.zeros((D, FH), jnp.float32)
    fb1 = jnp.zeros((1, FH), jnp.float32)
    fw2 = jnp.zeros((FH, FH), jnp.float32)
    fb2 = jnp.zeros((1, FH), jnp.float32)
    fw3 = jnp.zeros((FH, 2 * D), jnp.float32)
    fb3 = jnp.zeros((1, 2 * D), jnp.float32)
    fb3 = fb3.at[0, 0].set(p01[0]).at[0, D].set(p01[1])   # dim-0 uses initial_param only
    for j in range(1, D):
        w1, b1 = linear(j, H)   # true conditioner input dim = j (autoregressive)
        w2, b2 = linear(H, H)
        w3, b3 = linear(H, 2)
        blk = slice((j - 1) * H, j * H)
        fw1 = fw1.at[:j, blk].set(w1)            # rows >= j stay zero (mask)
        fb1 = fb1.at[:, blk].set(b1)
        fw2 = fw2.at[blk, blk].set(w2)           # block-diagonal
        fb2 = fb2.at[:, blk].set(b2)
        fw3 = fw3.at[blk, j].set(w3[:, 0])       # mu_j
        fw3 = fw3.at[blk, D + j].set(w3[:, 1])   # alpha_j
        fb3 = fb3.at[0, j].set(b3[0, 0]).at[0, D + j].set(b3[0, 1])

    rev = jnp.flip(jnp.eye(D, dtype=jnp.float32), axis=1)  # lane-reversal permutation

    blob = jnp.zeros(PBLOB_SHAPE, jnp.float32)

    def put(b, row, arr):
        return b.at[row:row + arr.shape[0], :arr.shape[1]].set(arr)

    blob = put(blob, ROW_EW, ew)
    blob = put(blob, ROW_EB, eb)
    blob = put(blob, ROW_FW1, fw1)
    blob = put(blob, ROW_FB1, fb1)
    blob = put(blob, ROW_FW2, fw2)
    blob = put(blob, ROW_FB2, fb2)
    blob = put(blob, ROW_FW3, fw3)
    blob = put(blob, ROW_FB3, fb3)
    blob = put(blob, ROW_DW, dw)
    blob = put(blob, ROW_DB, db)
    blob = put(blob, ROW_REV, rev)
    return blob


def vae_nf_forward(x, noise, pblob):
    B = x.shape[0]
    vmem = lambda: pl.BlockSpec(memory_space=pltpu.MemorySpace.VMEM)
    x_prime, kl = pl.pallas_call(
        vae_nf_kernel,
        out_shape=(jax.ShapeDtypeStruct((B, IN_DIM), jnp.float32),
                   jax.ShapeDtypeStruct((1, 1), jnp.float32)),
        in_specs=[vmem(), vmem(), vmem()],
        out_specs=(vmem(), vmem()),
    )(x, noise, pblob)
    return x_prime, kl[0, 0]


if __name__ == "__main__":
    B = 8
    key = jax.random.PRNGKey(0)
    kx, kn, kp = jax.random.split(key, 3)
    x = jax.random.normal(kx, (B, IN_DIM), jnp.float32)
    # torch.randn_like(sigma): RNG drawn deterministically here and fed in.
    noise = jax.random.normal(kn, (B, D), jnp.float32)
    pblob = init_params(kp)

    x_prime, kl = vae_nf_forward(x, noise, pblob)
    jax.block_until_ready((x_prime, kl))

    assert x_prime.shape == (B, IN_DIM)
    assert x_prime.dtype == jnp.float32
    assert kl.shape == ()
    assert bool(jnp.isfinite(x_prime).all()) and bool(jnp.isfinite(kl))
    print("KERNEL_OK")
</pallas_src>

<mosaic_0001>
module attributes {stable_mosaic.version = 11 : i64} {
  func.func @vae_nf_kernel(%arg0: memref<8x12xf32, #tpu.memory_space<vmem>>, %arg1: memref<8x6xf32, #tpu.memory_space<vmem>>, %arg2: memref<160x128xf32, #tpu.memory_space<vmem>>, %arg3: memref<8x12xf32, #tpu.memory_space<vmem>>, %arg4: memref<1x1xf32, #tpu.memory_space<vmem>>) attributes {dimension_semantics = [], scalar_prefetch = 0 : i64, scratch_operands = 0 : i64, tpu.core_type = #tpu.core_type<tc>} {
    %c0 = arith.constant 0 : index
    %c0_0 = arith.constant 0 : index
    %0 = vector.load %arg2[%c0, %c0_0] : memref<160x128xf32, #tpu.memory_space<vmem>>, vector<12x12xf32>
    %c16 = arith.constant 16 : index
    %c0_1 = arith.constant 0 : index
    %1 = vector.load %arg2[%c16, %c0_1] : memref<160x128xf32, #tpu.memory_space<vmem>>, vector<1x12xf32>
    %c24 = arith.constant 24 : index
    %c0_2 = arith.constant 0 : index
    %2 = vector.load %arg2[%c24, %c0_2] : memref<160x128xf32, #tpu.memory_space<vmem>>, vector<6x40xf32>
    %c32 = arith.constant 32 : index
    %c0_3 = arith.constant 0 : index
    %3 = vector.load %arg2[%c32, %c0_3] : memref<160x128xf32, #tpu.memory_space<vmem>>, vector<1x40xf32>
    %c40 = arith.constant 40 : index
    %c0_4 = arith.constant 0 : index
    %4 = vector.load %arg2[%c40, %c0_4] : memref<160x128xf32, #tpu.memory_space<vmem>>, vector<40x40xf32>
    %c80 = arith.constant 80 : index
    %c0_5 = arith.constant 0 : index
    %5 = vector.load %arg2[%c80, %c0_5] : memref<160x128xf32, #tpu.memory_space<vmem>>, vector<1x40xf32>
    %c88 = arith.constant 88 : index
    %c0_6 = arith.constant 0 : index
    %6 = vector.load %arg2[%c88, %c0_6] : memref<160x128xf32, #tpu.memory_space<vmem>>, vector<40x12xf32>
    %c128 = arith.constant 128 : index
    %c0_7 = arith.constant 0 : index
    %7 = vector.load %arg2[%c128, %c0_7] : memref<160x128xf32, #tpu.memory_space<vmem>>, vector<1x12xf32>
    %c136 = arith.constant 136 : index
    %c0_8 = arith.constant 0 : index
    %8 = vector.load %arg2[%c136, %c0_8] : memref<160x128xf32, #tpu.memory_space<vmem>>, vector<6x12xf32>
    %c144 = arith.constant 144 : index
    %c0_9 = arith.constant 0 : index
    %9 = vector.load %arg2[%c144, %c0_9] : memref<160x128xf32, #tpu.memory_space<vmem>>, vector<1x12xf32>
    %c152 = arith.constant 152 : index
    %c0_10 = arith.constant 0 : index
    %10 = vector.load %arg2[%c152, %c0_10] : memref<160x128xf32, #tpu.memory_space<vmem>>, vector<6x6xf32>
    %c0_11 = arith.constant 0 : index
    %c0_12 = arith.constant 0 : index
    %11 = vector.load %arg0[%c0_11, %c0_12] : memref<8x12xf32, #tpu.memory_space<vmem>>, vector<8x12xf32>
    %cst = arith.constant dense<0.000000e+00> : vector<8x12xf32>
    %12 = tpu.matmul %11, %0, %cst {dimension_numbers = #tpu.dot_dimension_numbers<[1], [0], [0], [1], [0, 0, 1, 1], [], []>} : vector<8x12xf32>, vector<12x12xf32>, vector<8x12xf32> -> vector<8x12xf32>
    %13 = vector.broadcast %1 : vector<1x12xf32> to vector<8x12xf32>
    %14 = arith.addf %12, %13 : vector<8x12xf32>
    %15 = vector.extract_strided_slice %14 {offsets = [0, 0], sizes = [8, 6], strides = [1, 1]} : vector<8x12xf32> to vector<8x6xf32>
    %16 = vector.extract_strided_slice %14 {offsets = [0, 6], sizes = [8, 6], strides = [1, 1]} : vector<8x12xf32> to vector<8x6xf32>
    %cst_13 = arith.constant 5.000000e-01 : f32
    %17 = vector.broadcast %cst_13 : f32 to vector<8x6xf32>
    %18 = arith.mulf %17, %16 : vector<8x6xf32>
    %19 = math.exp %18 : vector<8x6xf32>
    %c0_14 = arith.constant 0 : index
    %c0_15 = arith.constant 0 : index
    %20 = vector.load %arg1[%c0_14, %c0_15] : memref<8x6xf32, #tpu.memory_space<vmem>>, vector<8x6xf32>
    %21 = arith.mulf %19, %20 : vector<8x6xf32>
    %22 = arith.addf %15, %21 : vector<8x6xf32>
    %cst_16 = arith.constant 0.000000e+00 : f32
    %23 = vector.broadcast %cst_16 : f32 to vector<8x1xf32>
    %cst_17 = arith.constant dense<0.000000e+00> : vector<8x40xf32>
    %24 = tpu.matmul %22, %2, %cst_17 {dimension_numbers = #tpu.dot_dimension_numbers<[1], [0], [0], [1], [0, 0, 1, 1], [], []>} : vector<8x6xf32>, vector<6x40xf32>, vector<8x40xf32> -> vector<8x40xf32>
    %25 = vector.broadcast %3 : vector<1x40xf32> to vector<8x40xf32>
    %26 = arith.addf %24, %25 : vector<8x40xf32>
    %27 = math.tanh %26 : vector<8x40xf32>
    %cst_18 = arith.constant dense<0.000000e+00> : vector<8x40xf32>
    %28 = tpu.matmul %27, %4, %cst_18 {dimension_numbers = #tpu.dot_dimension_numbers<[1], [0], [0], [1], [0, 0, 1, 1], [], []>} : vector<8x40xf32>, vector<40x40xf32>, vector<8x40xf32> -> vector<8x40xf32>
    %29 = vector.broadcast %5 : vector<1x40xf32> to vector<8x40xf32>
    %30 = arith.addf %28, %29 : vector<8x40xf32>
    %31 = math.tanh %30 : vector<8x40xf32>
    %cst_19 = arith.constant dense<0.000000e+00> : vector<8x12xf32>
    %32 = tpu.matmul %31, %6, %cst_19 {dimension_numbers = #tpu.dot_dimension_numbers<[1], [0], [0], [1], [0, 0, 1, 1], [], []>} : vector<8x40xf32>, vector<40x12xf32>, vector<8x12xf32> -> vector<8x12xf32>
    %33 = vector.broadcast %7 : vector<1x12xf32> to vector<8x12xf32>
    %34 = arith.addf %32, %33 : vector<8x12xf32>
    %35 = vector.extract_strided_slice %34 {offsets = [0, 0], sizes = [8, 6], strides = [1, 1]} : vector<8x12xf32> to vector<8x6xf32>
    %36 = vector.extract_strided_slice %34 {offsets = [0, 6], sizes = [8, 6], strides = [1, 1]} : vector<8x12xf32> to vector<8x6xf32>
    %37 = arith.subf %22, %35 : vector<8x6xf32>
    %cst_20 = arith.constant 0.000000e+00 : f32
    %38 = vector.broadcast %cst_20 : f32 to vector<8x6xf32>
    %39 = arith.subf %38, %36 : vector<8x6xf32>
    %40 = math.exp %39 : vector<8x6xf32>
    %41 = arith.mulf %37, %40 : vector<8x6xf32>
    %cst_21 = arith.constant dense<0.000000e+00> : vector<8xf32>
    %42 = vector.multi_reduction <add>, %36, %cst_21 [1] : vector<8x6xf32> to vector<8xf32>
    %43 = vector.shape_cast %42 : vector<8xf32> to vector<8x1xf32>
    %44 = arith.subf %23, %43 : vector<8x1xf32>
    %cst_22 = arith.constant dense<0.000000e+00> : vector<8x6xf32>
    %45 = tpu.matmul %41, %10, %cst_22 {dimension_numbers = #tpu.dot_dimension_numbers<[1], [0], [0], [1], [0, 0, 1, 1], [], []>} : vector<8x6xf32>, vector<6x6xf32>, vector<8x6xf32> -> vector<8x6xf32>
    %cst_23 = arith.constant dense<0.000000e+00> : vector<8x40xf32>
    %46 = tpu.matmul %45, %2, %cst_23 {dimension_numbers = #tpu.dot_dimension_numbers<[1], [0], [0], [1], [0, 0, 1, 1], [], []>} : vector<8x6xf32>, vector<6x40xf32>, vector<8x40xf32> -> vector<8x40xf32>
    %47 = vector.broadcast %3 : vector<1x40xf32> to vector<8x40xf32>
    %48 = arith.addf %46, %47 : vector<8x40xf32>
    %49 = math.tanh %48 : vector<8x40xf32>
    %cst_24 = arith.constant dense<0.000000e+00> : vector<8x40xf32>
    %50 = tpu.matmul %49, %4, %cst_24 {dimension_numbers = #tpu.dot_dimension_numbers<[1], [0], [0], [1], [0, 0, 1, 1], [], []>} : vector<8x40xf32>, vector<40x40xf32>, vector<8x40xf32> -> vector<8x40xf32>
    %51 = vector.broadcast %5 : vector<1x40xf32> to vector<8x40xf32>
    %52 = arith.addf %50, %51 : vector<8x40xf32>
    %53 = math.tanh %52 : vector<8x40xf32>
    %cst_25 = arith.constant dense<0.000000e+00> : vector<8x12xf32>
    %54 = tpu.matmul %53, %6, %cst_25 {dimension_numbers = #tpu.dot_dimension_numbers<[1], [0], [0], [1], [0, 0, 1, 1], [], []>} : vector<8x40xf32>, vector<40x12xf32>, vector<8x12xf32> -> vector<8x12xf32>
    %55 = vector.broadcast %7 : vector<1x12xf32> to vector<8x12xf32>
    %56 = arith.addf %54, %55 : vector<8x12xf32>
    %57 = vector.extract_strided_slice %56 {offsets = [0, 0], sizes = [8, 6], strides = [1, 1]} : vector<8x12xf32> to vector<8x6xf32>
    %58 = vector.extract_strided_slice %56 {offsets = [0, 6], sizes = [8, 6], strides = [1, 1]} : vector<8x12xf32> to vector<8x6xf32>
    %59 = arith.subf %45, %57 : vector<8x6xf32>
    %cst_26 = arith.constant 0.000000e+00 : f32
    %60 = vector.broadcast %cst_26 : f32 to vector<8x6xf32>
    %61 = arith.subf %60, %58 : vector<8x6xf32>
    %62 = math.exp %61 : vector<8x6xf32>
    %63 = arith.mulf %59, %62 : vector<8x6xf32>
    %cst_27 = arith.constant dense<0.000000e+00> : vector<8xf32>
    %64 = vector.multi_reduction <add>, %58, %cst_27 [1] : vector<8x6xf32> to vector<8xf32>
    %65 = vector.shape_cast %64 : vector<8xf32> to vector<8x1xf32>
    %66 = arith.subf %44, %65 : vector<8x1xf32>
    %cst_28 = arith.constant dense<0.000000e+00> : vector<8x6xf32>
    %67 = tpu.matmul %63, %10, %cst_28 {dimension_numbers = #tpu.dot_dimension_numbers<[1], [0], [0], [1], [0, 0, 1, 1], [], []>} : vector<8x6xf32>, vector<6x6xf32>, vector<8x6xf32> -> vector<8x6xf32>
    %cst_29 = arith.constant 1.000000e+00 : f32
    %68 = vector.broadcast %cst_29 : f32 to vector<8x6xf32>
    %69 = arith.addf %68, %16 : vector<8x6xf32>
    %70 = arith.mulf %15, %15 : vector<8x6xf32>
    %71 = arith.subf %69, %70 : vector<8x6xf32>
    %72 = math.exp %16 : vector<8x6xf32>
    %73 = arith.subf %71, %72 : vector<8x6xf32>
    %74 = vector.shape_cast %73 : vector<8x6xf32> to vector<1x8x6xf32>
    %cst_30 = arith.constant dense<0.000000e+00> : vector<1xf32>
    %75 = vector.multi_reduction <add>, %74, %cst_30 [1, 2] : vector<1x8x6xf32> to vector<1xf32>
    %76 = vector.shape_cast %75 : vector<1xf32> to vector<1x1x1xf32>
    %77 = vector.extract %76[0, 0, 0] : f32 from vector<1x1x1xf32>
    %78 = vector.broadcast %77 : f32 to vector<1x1xf32>
    %79 = vector.shape_cast %66 : vector<8x1xf32> to vector<1x8x1xf32>
    %cst_31 = arith.constant dense<0.000000e+00> : vector<1xf32>
    %80 = vector.multi_reduction <add>, %79, %cst_31 [1, 2] : vector<1x8x1xf32> to vector<1xf32>
    %81 = vector.shape_cast %80 : vector<1xf32> to vector<1x1x1xf32>
    %82 = vector.extract %81[0, 0, 0] : f32 from vector<1x1x1xf32>
    %83 = vector.broadcast %82 : f32 to vector<1x1xf32>
    %cst_32 = arith.constant 8.000000e+00 : f32
    %84 = vector.broadcast %cst_32 : f32 to vector<1x1xf32>
    %85 = arith.divf %83, %84 : vector<1x1xf32>
    %cst_33 = arith.constant -5.000000e-01 : f32
    %86 = vector.broadcast %cst_33 : f32 to vector<1x1xf32>
    %87 = arith.mulf %86, %78 : vector<1x1xf32>
    %cst_34 = arith.constant 8.000000e+00 : f32
    %88 = vector.broadcast %cst_34 : f32 to vector<1x1xf32>
    %89 = arith.divf %87, %88 : vector<1x1xf32>
    %90 = arith.subf %89, %85 : vector<1x1xf32>
    %c0_35 = arith.constant 0 : index
    %c0_36 = arith.constant 0 : index
    %91 = vector.load %arg4[%c0_35, %c0_36] : memref<1x1xf32, #tpu.memory_space<vmem>>, vector<1x1xf32>
    tpu.vector_store %arg4[%c0_35, %c0_36], %90 {strides = array<i32>} : memref<1x1xf32, #tpu.memory_space<vmem>>, vector<1x1xf32>,
    %cst_37 = arith.constant dense<0.000000e+00> : vector<8x12xf32>
    %92 = tpu.matmul %67, %8, %cst_37 {dimension_numbers = #tpu.dot_dimension_numbers<[1], [0], [0], [1], [0, 0, 1, 1], [], []>} : vector<8x6xf32>, vector<6x12xf32>, vector<8x12xf32> -> vector<8x12xf32>
    %93 = vector.broadcast %9 : vector<1x12xf32> to vector<8x12xf32>
    %94 = arith.addf %92, %93 : vector<8x12xf32>
    %c0_38 = arith.constant 0 : index
    %c0_39 = arith.constant 0 : index
    %95 = vector.load %arg3[%c0_38, %c0_39] : memref<8x12xf32, #tpu.memory_space<vmem>>, vector<8x12xf32>
    tpu.vector_store %arg3[%c0_38, %c0_39], %94 {strides = array<i32>} : memref<8x12xf32, #tpu.memory_space<vmem>>, vector<8x12xf32>,
    return
  }
}

</mosaic_0001>

<bundles_post_ra>
// kernel: tpu_custom_call.1
= control target key start
LH: loop header
LB: loop body
LE: loop exit
PB: predicated region body
PF: predicated region fallthrough
CT: control target
= control target key end

     0   :  { %10 = vsyncpa [#allocation3], 0  ;;  %s1416_s0 = inlined_call_operand.hbm [shape: f32[8,12], index: 0, kind: input, shape index: {}]   ;;  %s1417_s1 = inlined_call_operand.hbm [shape: f32[8,6], index: 1, kind: input, shape index: {}]   ;;  %s1418_s2 = inlined_call_operand.hbm [shape: f32[160,128], index: 2, kind: input, shape index: {}]   ;;  %s1419_s3 = inlined_call_operand.hbm [shape: f32[8,12], index: 3, kind: output, shape index: {0}]   ;;  %s1420_s4 = inlined_call_operand.hbm [shape: f32[1,1], index: 4, kind: output, shape index: {1}]  }
   0x1   :  { %11 = vsyncpa [#allocation6], 0 }
   0x2   :  { %12 = vsyncpa [#allocation4], 0 }
   0x3   :  { %13 = vsyncpa [#allocation10], 0  ;;  %s1251_s15 = smov [#allocation5]   ;;  %s1252_s17 = smov [#allocation2]  }
   0x4   :  { %s30_s16 = sshll.u32 %s1251_s15, 4  ;;  %s20_s18 = sshll.u32 %s1252_s17, 4  ;;  %s31_s16 = int_to_ptr.vmem [resolvable:$true] %s30_s16  ;;  %s21_s18 = int_to_ptr.vmem [resolvable:$true] %s20_s18 }
   0x5   :  { %s1151_s19 = scalar_lea.vmem %s31_s16, 128  ;;  %p1156_p1 = scmp.lt.s32.totalorder %s31_s16, %s31_s16 }
   0x6   :  { %p1152_p0 = scmp.ne.s32.totalorder %s31_s16, %s1151_s19  ;;  %p1157_p2 = scmp.lt.s32.totalorder %s1151_s19, %s1151_s19 }
   0x8   :  { %p1158_p3 = por %p1157_p2, %p1156_p1 }
   0xa   :  { %p1159_p4 = pnand %p1158_p3, %p1152_p0 }
   0xc   :  { %1162 = shalt.err (!%p1159_p4)
}
   0xd   :  { %33 = dma.hbm_to_vmem [thread:$0]  %s1417_s1, 128, %s31_s16, [#allocation6]  }
   0xe   :  { %s1171_s22 = scalar_lea.vmem %s21_s18, 128  ;;  %p1176_p6 = scmp.lt.s32.totalorder %s21_s18, %s21_s18 }
   0xf   :  { %p1172_p5 = scmp.ne.s32.totalorder %s21_s18, %s1171_s22  ;;  %p1177_p7 = scmp.lt.s32.totalorder %s1171_s22, %s1171_s22 }
  0x11   :  { %p1178_p8 = por %p1177_p7, %p1176_p6 }
  0x13   :  { %p1179_p9 = pnand %p1178_p8, %p1172_p5 }
  0x15   :  { %1182 = shalt.err (!%p1179_p9)
}
  0x16   :  { %23 = dma.hbm_to_vmem [thread:$0]  %s1416_s0, 128, %s21_s18, [#allocation3]  }
  0x17   :  { %s1253_s25 = smov [#allocation7]  }
  0x18   :  { %s39_s26 = sshll.u32 %s1253_s25, 4  ;;  %s40_s26 = int_to_ptr.vmem [resolvable:$true] %s39_s26 }
  0x19   :  { %s1191_s27 = scalar_lea.vmem %s40_s26, 2560  ;;  %p1196_p11 = scmp.lt.s32.totalorder %s40_s26, %s40_s26 }
  0x1a   :  { %p1192_p10 = scmp.ne.s32.totalorder %s40_s26, %s1191_s27  ;;  %p1197_p12 = scmp.lt.s32.totalorder %s1191_s27, %s1191_s27 }
  0x1c   :  { %p1198_p13 = por %p1197_p12, %p1196_p11 }
  0x1e   :  { %p1199_p0 = pnand %p1198_p13, %p1192_p10 }
  0x20   :  { %1202 = shalt.err (!%p1199_p0)
}
  0x21   :  { %s1254_s1 = smov 128   ;;  %s1255_s28 = smov 8  }
  0x22   :  { %45 = dma.hbm_to_vmem [thread:$0]  %s1418_s2, 2560, %s40_s26, [#allocation6], %s1254_s1, %s1254_s1, %s1255_s28  }
  0x23   :  { %1243 = dma.done.wait [#allocation3], 128  }
  0x24   :  { %1244 = vsyncadd [#allocation3], 4294967168 }
  0x25   :  { %1245 = dma.done.wait [#allocation6], 2688  }
  0x26   :  { %1246 = vsyncadd [#allocation6], 4294964608  ;;  %v1256_v0 = vmov 0.0   ;;  %vm1257_vm0 = vmmov 0   ;;  %vm84_vm1 = vcmask 1043456   ;;  %v55_v2 = vld [vmem:[#allocation7] sm:$0xff] }
  0x27   :  { %1028 = vmatprep.subr.mxu0 %v1256_v0  ;;  %1032 = vmatprep.mubr.msk.f32.mxu0 %vm1257_vm0, %v1256_v0  ;;  %v56_v1 = vld [vmem:[#allocation7 + $0x8] sm:$0xf]  ;;  %v75_v3 = vld [vmem:[#allocation2] sm:$0xff]  ;;  %vm80_vm2 = vcmask 97280   ;;  %v161_v4 = vld [vmem:[#allocation5] sm:$0xff]  ;;  %s1258_s0 = smov 6  }
  0x28   :  { %1035 = vmatprep.subr.mxu1 %v1256_v0  ;;  %1037 = vmatprep.mubr.msk.f32.mxu1 %vm1257_vm0, %v1256_v0  ;;  %v970_v5 = vld [vmem:[#allocation7 + $0x10] ss:$0 sm:$0xff]  ;;  %v58_v11 = vld [vmem:[#allocation7 + $0x18] sm:$0x3f]  ;;  %vm180_vm3 = vcmask 1045504   ;;  %s1259_s2 = smov 122  }
  0x29   :  { %1029 = vmatpush3.msk.msra.mxu0 %vm84_vm1, %v56_v1  ;;  %163 = vrot.lane.b32.xlu0 %v161_v4, %s1258_s0  ;;  %vm176_vm4 = vcmask 48128   ;;  %v1321_v17 = vld [vmem:[#allocation7 + $0x48] sm:$0xff]  ;;  %v1323_v18 = vld [vmem:[#allocation7 + $0x40] sm:$0xff]  ;;  %v1327_v19 = vld [vmem:[#allocation7 + $0x38] sm:$0xff]  ;;  %vm259_vm5 = vcmask 326656   ;;  %vm840_vm6 = vcmask 7168  }
  0x2a   :  { %1030 = vmatprep.subr.mxu0 %v1256_v0  ;;  %1036 = vmatpush3.msk.msra.mxu1 %vm180_vm3, %v58_v11  ;;  %v1331_v20 = vld [vmem:[#allocation7 + $0x30] sm:$0xff]  ;;  %v1335_v21 = vld [vmem:[#allocation7 + $0x28] sm:$0xff]  ;;  %v1341_v22 = vld [vmem:[#allocation7 + $0x20] ss:$0 sm:$0xff]  ;;  %s1260_s7 = smov [#allocation9]   ;;  %vm857_vm7 = vcmask 0  }
  0x2b   :  { %1031 = vmatpush3.msra.mxu0 %v55_v2  ;;  %1040 = vmatprep.subr.mxu1 %v1256_v0  ;;  %v70_v27 = vld [vmem:[#allocation7 + $0x78] sm:$0xff]  ;;  %v69_v28 = vld [vmem:[#allocation7 + $0x70] sm:$0xff]  ;;  %v68_v29 = vld [vmem:[#allocation7 + $0x68] sm:$0xff]  ;;  %s956_s8 = sshll.u32 %s1260_s7, 4  ;;  %s957_s8 = int_to_ptr.vmem [resolvable:$true] %s956_s8 }
  0x2c   :  { %1033 = vmatmul.mubr.msk.f32.vlgmr.msra.gmra.mxu0 %vm80_vm2, %v75_v3  ;;  %1053 = vmatprep.subr.mxu0 %v1256_v0  ;;  %v67_v30 = vld [vmem:[#allocation7 + $0x60] sm:$0xff]  ;;  %v66_v31 = vld [vmem:[#allocation7 + $0x58] sm:$0xff]  ;;  %v1352_v32 = vld [vmem:[#allocation7 + $0x50] ss:$0 sm:$0xff]  ;;  %s1203_s9 = scalar_lea.vmem %s957_s8, 16  ;;  %s1207_s10 = scalar_lea.vmem %s957_s8, 32 }
  0x2d   :  { %1063 = vmatprep.mubr.msk.f32.mxu0 %vm1257_vm0, %v1256_v0  ;;  %1054 = vmatpush3.msra.mxu0 %v70_v27  ;;  %v74_v37 = vld [vmem:[#allocation7 + $0x98] sm:$0x3f]  ;;  %v978_v38 = vld [vmem:[#allocation7 + $0x80] ss:$0 sm:$0xff]  ;;  %p1204_p1 = scmp.ne.s32.totalorder %s957_s8, %s1203_s9  ;;  %p1208_p2 = scmp.lt.s32.totalorder %s957_s8, %s957_s8 }
  0x2e   :  { %1055 = vmatprep.subr.mxu0 %v1256_v0  ;;  %p1209_p3 = scmp.lt.s32.totalorder %s1207_s10, %s1203_s9 }
  0x2f   :  { %1056 = vmatpush3.msra.mxu0 %v69_v28 }
  0x30   :  { %1057 = vmatprep.subr.mxu0 %v1256_v0  ;;  %p1210_p4 = por %p1209_p3, %p1208_p2 }
  0x31   :  { %1058 = vmatpush3.msra.mxu0 %v68_v29 }
  0x32   :  { %1059 = vmatprep.subr.mxu0 %v1256_v0  ;;  %p1211_p5 = pnand %p1210_p4, %p1204_p1 }
  0x33   :  { %1060 = vmatpush3.msra.mxu0 %v67_v30 }
  0x34   :  { %1061 = vmatprep.subr.mxu0 %v1256_v0 }
  0x35   :  { %1062 = vmatpush3.msra.mxu0 %v66_v31 }
  0x36   :  { %1071 = vmatprep.subr.mxu0 %v1256_v0 }
  0x9b   :  { %v164_v12 = vpop.permute.xlu0 %163 }
  0xec   :  { %v154_v6 = vpop.f32.mrf.mxu0 }
  0xed   :  { %v1308_v7 = vadd.f32 %v970_v5, %v154_v6 }
  0xee   :  { %v1034_v8 = vpop.f32.mrf.mxu0 }
  0xef   :  { %v158_v9 = vmul.f32 0.5, %v1308_v7  ;;  %v816_v44 = vmul.f32 %v1308_v7, %v1308_v7 }
  0xf1   :  { %v159_v10 = vmul.f32 1.442695, %v158_v9  ;;  %v822_v9 = vmul.f32 1.442695, %v1308_v7 }
  0xf3   :  { %1127 = vpow2.f32 %v159_v10 }
 0x100   :  { %v1128_v13 = vpop.eup %1127 }
 0x101   :  { %v166_v14 = vmul.f32 %v1128_v13, %v164_v12 }
 0x103   :  { %168 = vrot.lane.b32.xlu0 %v166_v14, %s1259_s2  ;;  %v72_v14 = vld [vmem:[#allocation7 + $0x88] sm:$0x3f] }
 0x175   :  { %v169_v15 = vpop.permute.xlu0 %168 }
 0x176   :  { %v1315_v16 = vadd.f32 %v169_v15, %v1308_v7 }
 0x178   :  { %1038 = vmatmul.mubr.msk.f32.vlgmr.msra.gmra.mxu1 %vm176_vm4, %v1315_v16 }
 0x179   :  { %1050 = vmatprep.mubr.msk.f32.mxu1 %vm1257_vm0, %v1256_v0  ;;  %1041 = vmatpush3.msra.mxu1 %v1321_v17 }
 0x17a   :  { %1042 = vmatprep.subr.mxu1 %v1256_v0 }
 0x17b   :  { %1043 = vmatpush3.msra.mxu1 %v1323_v18 }
 0x17c   :  { %1044 = vmatprep.subr.mxu1 %v1256_v0 }
 0x17d   :  { %1045 = vmatpush3.msra.mxu1 %v1327_v19 }
 0x17e   :  { %1046 = vmatprep.subr.mxu1 %v1256_v0 }
 0x17f   :  { %1047 = vmatpush3.msra.mxu1 %v1331_v20 }
 0x180   :  { %1048 = vmatprep.subr.mxu1 %v1256_v0 }
 0x181   :  { %1049 = vmatpush3.msra.mxu1 %v1335_v21 }
 0x182   :  { %1066 = vmatprep.subr.mxu1 %v1256_v0 }
 0x238   :  { %v250_v23 = vpop.f32.mrf.mxu1 }
 0x239   :  { %v251_v24 = vadd.f32 %v1341_v22, %v250_v23 }
 0x23a   :  { %v1039_v25 = vpop.f32.mrf.mxu1 }
 0x23b   :  { %1129 = vtanh.f32 %v251_v24 }
 0x248   :  { %v1130_v26 = vpop.eup %1129 }
 0x249   :  { %1051 = vmatmul.mubr.msk.f32.vlgmr.msra.gmra.mxu1 %vm259_vm5, %v1130_v26 }
 0x24a   :  { %1068 = vmatprep.mubr.msk.f32.mxu1 %vm1257_vm0, %v1256_v0  ;;  %1067 = vmatpush3.msk.msra.mxu1 %vm180_vm3, %v74_v37 }
 0x24b   :  { %1076 = vmatprep.subr.mxu1 %v1256_v0 }
 0x309   :  { %v329_v33 = vpop.f32.mrf.mxu1 }
 0x30a   :  { %v330_v34 = vadd.f32 %v1352_v32, %v329_v33 }
 0x30b   :  { %v1052_v35 = vpop.f32.mrf.mxu1 }
 0x30c   :  { %1131 = vtanh.f32 %v330_v34 }
 0x319   :  { %v1132_v36 = vpop.eup %1131 }
 0x31a   :  { %1064 = vmatmul.mubr.msk.f32.vlgmr.msra.gmra.mxu0 %vm259_vm5, %v1132_v36 }
 0x31b   :  { %1072 = vmatpush3.msk.msra.mxu0 %vm180_vm3, %v58_v11  ;;  %1073 = vmatprep.mubr.msk.f32.mxu0 %vm1257_vm0, %v1256_v0  ;;  %v815_v11 = vadd.f32 1.0, %v1308_v7 }
 0x31c   :  { %1089 = vmatprep.subr.mxu0 %v1256_v0 }
 0x3da   :  { %v407_v39 = vpop.f32.mrf.mxu0 }
 0x3db   :  { %v408_v40 = vadd.f32 %v978_v38, %v407_v39 }
 0x3dc   :  { %v1065_v41 = vpop.f32.mrf.mxu0 }
 0x3dd   :  { %v412_v42 = vsub.f32 0.0, %v408_v40  ;;  %421 = vrot.lane.b32.xlu0 %v408_v40, %s1259_s2  ;;  %v411_v46 = vsub.f32 %v1315_v16, %v408_v40 }
 0x3df   :  { %v413_v43 = vmul.f32 1.442695, %v412_v42 }
 0x3e1   :  { %1133 = vpow2.f32 %v413_v43  ;;  %818 = vrot.lane.b32.xlu0 %v816_v44, %s1258_s0 }
 0x3ee   :  { %v1134_v45 = vpop.eup %1133 }
 0x3ef   :  { %416 = vrot.lane.b32.xlu1 %v1134_v45, %s1259_s2 }
 0x44f   :  { %v422_v2 = vpop.permute.xlu0 %421 }
 0x450   :  { %v424_v3 = vsel %vm176_vm4, %v422_v2, 0.0 }
 0x453   :  { %v819_v10 = vpop.permute.xlu0 %818 }
 0x454   :  { %v821_v12 = vsub.f32 %v815_v11, %v819_v10 }
 0x461   :  { %v417_v47 = vpop.permute.xlu1 %416 }
 0x462   :  { %v419_v48 = vmul.f32 %v417_v47, %v411_v46 }
 0x464   :  { %1069 = vmatmul.mubr.msk.f32.vlgmr.msra.gmra.mxu1 %vm176_vm4, %v419_v48 }
 0x465   :  { %1077 = vmatpush3.msra.mxu1 %v1321_v17  ;;  %1086 = vmatprep.mubr.msk.f32.mxu1 %vm1257_vm0, %v1256_v0 }
 0x466   :  { %1078 = vmatprep.subr.mxu1 %v1256_v0 }
 0x467   :  { %1079 = vmatpush3.msra.mxu1 %v1323_v18 }
 0x468   :  { %1080 = vmatprep.subr.mxu1 %v1256_v0 }
 0x469   :  { %1081 = vmatpush3.msra.mxu1 %v1327_v19 }
 0x46a   :  { %1082 = vmatprep.subr.mxu1 %v1256_v0 }
 0x46b   :  { %1083 = vmatpush3.msra.mxu1 %v1331_v20 }
 0x46c   :  { %1084 = vmatprep.subr.mxu1 %v1256_v0 }
 0x46d   :  { %1085 = vmatpush3.msra.mxu1 %v1335_v21 }
 0x46e   :  { %1102 = vmatprep.subr.mxu1 %v1256_v0 }
 0x524   :  { %v500_v49 = vpop.f32.mrf.mxu1 }
 0x525   :  { %1074 = vmatmul.mubr.msk.f32.vlgmr.msra.gmra.mxu0 %vm176_vm4, %v500_v49 }
 0x526   :  { %v1070_v50 = vpop.f32.mrf.mxu1  ;;  %1090 = vmatpush3.msra.mxu0 %v70_v27  ;;  %1099 = vmatprep.mubr.msk.f32.mxu0 %vm1257_vm0, %v1256_v0 }
 0x527   :  { %1091 = vmatprep.subr.mxu0 %v1256_v0 }
 0x528   :  { %1092 = vmatpush3.msra.mxu0 %v69_v28 }
 0x529   :  { %1093 = vmatprep.subr.mxu0 %v1256_v0 }
 0x52a   :  { %1094 = vmatpush3.msra.mxu0 %v68_v29 }
 0x52b   :  { %1095 = vmatprep.subr.mxu0 %v1256_v0 }
 0x52c   :  { %1096 = vmatpush3.msra.mxu0 %v67_v30 }
 0x52d   :  { %1097 = vmatprep.subr.mxu0 %v1256_v0 }
 0x52e   :  { %1098 = vmatpush3.msra.mxu0 %v66_v31 }
 0x52f   :  { %1107 = vmatprep.subr.mxu0 %v1256_v0 }
 0x5e5   :  { %v573_v51 = vpop.f32.mrf.mxu0 }
 0x5e6   :  { %v574_v52 = vadd.f32 %v1341_v22, %v573_v51 }
 0x5e7   :  { %v1075_v53 = vpop.f32.mrf.mxu0 }
 0x5e8   :  { %1135 = vtanh.f32 %v574_v52 }
 0x5f5   :  { %v1136_v54 = vpop.eup %1135 }
 0x5f6   :  { %1087 = vmatmul.mubr.msk.f32.vlgmr.msra.gmra.mxu1 %vm259_vm5, %v1136_v54 }
 0x5f7   :  { %1103 = vmatpush3.msk.msra.mxu1 %vm180_vm3, %v74_v37  ;;  %1104 = vmatprep.mubr.msk.f32.mxu1 %vm1257_vm0, %v1256_v0 }
 0x6b6   :  { %v647_v55 = vpop.f32.mrf.mxu1 }
 0x6b7   :  { %v648_v56 = vadd.f32 %v1352_v32, %v647_v55 }
 0x6b8   :  { %v1088_v57 = vpop.f32.mrf.mxu1 }
 0x6b9   :  { %1137 = vtanh.f32 %v648_v56 }
 0x6c6   :  { %v1138_v58 = vpop.eup %1137 }
 0x6c7   :  { %1100 = vmatmul.mubr.msk.f32.vlgmr.msra.gmra.mxu0 %vm259_vm5, %v1138_v58 }
 0x6c8   :  { %1109 = vmatprep.mubr.msk.f32.mxu0 %vm1257_vm0, %v1256_v0  ;;  %1108 = vmatpush3.msk.msra.mxu0 %vm180_vm3, %v72_v14 }
 0x787   :  { %v721_v59 = vpop.f32.mrf.mxu0 }
 0x788   :  { %v722_v60 = vadd.f32 %v978_v38, %v721_v59 }
 0x789   :  { %v1101_v61 = vpop.f32.mrf.mxu0 }
 0x78a   :  { %v726_v62 = vsub.f32 0.0, %v722_v60  ;;  %v725_v4 = vsub.f32 %v500_v49, %v722_v60 }
 0x78c   :  { %v727_v63 = vmul.f32 1.442695, %v726_v62 }
 0x78e   :  { %1139 = vpow2.f32 %v727_v63 }
 0x78f   :  { %1141 = vpow2.f32 %v822_v9 }
 0x79b   :  { %v1140_v1 = vpop.eup %1139 }
 0x79c   :  { %730 = vrot.lane.b32.xlu1 %v1140_v1, %s1259_s2  ;;  %v1142_v13 = vpop.eup %1141 }
 0x79d   :  { %v824_v15 = vsub.f32 %v821_v12, %v1142_v13 }
 0x7a0   :  { %735 = vrot.lane.b32.xlu1 %v722_v60, %s1259_s2 }
 0x7c4   :  { %425 = vadd.xlane.f32.xlu1 %v424_v3 }
 0x80e   :  { %v731_v5 = vpop.permute.xlu1 %730 }
 0x80f   :  { %v733_v6 = vmul.f32 %v731_v5, %v725_v4 }
 0x811   :  { %1105 = vmatmul.mubr.msk.f32.vlgmr.msra.gmra.mxu1 %vm176_vm4, %v733_v6 }
 0x812   :  { %v736_v0 = vpop.permute.xlu1 %735 }
 0x813   :  { %v738_v8 = vsel %vm176_vm4, %v736_v0, 0.0 }
 0x814   :  { %739 = vadd.xlane.f32.xlu0 %v738_v8 }
 0x82a   :  { %826 = vrot.lane.b32.xlu0 %v824_v15, %s1259_s2 }
 0x84d   :  { %v426_v16 = vpop.xlane.xlu1 %425 }
 0x84e   :  { %v427_v18 = vsub.f32 0.0, %v426_v16 }
 0x89d   :  { %v740_v17 = vpop.xlane.xlu0 %739 }
 0x89e   :  { %v741_v20 = vsub.f32 %v427_v18, %v740_v17 }
 0x8a0   :  { %v841_v22 = vsel %vm840_vm6, %v741_v20, 0.0 }
 0x8a1   :  { %v827_v19 = vpop.permute.xlu0 %826 }
 0x8a2   :  { %v829_v21 = vsel %vm176_vm4, %v827_v19, 0.0 }
 0x8a3   :  { %830 = vadd.xlane.f32.xlu1 %v829_v21 }
 0x8a7   :  { %842 = vadd.xlane.f32.xlu1 %v841_v22 }
 0x8d1   :  { %v811_v7 = vpop.f32.mrf.mxu1 }
 0x8d2   :  { %1110 = vmatmul.mubr.msk.f32.vlgmr.msra.gmra.mxu0 %vm176_vm4, %v811_v7 }
 0x8d3   :  { %v1106_v23 = vpop.f32.mrf.mxu1 }
 0x92c   :  { %v831_v24 = vpop.xlane.xlu1 %830 }
 0x92d   :  { %v832_v25 = vrot.slane %v831_v24, 4 }
 0x92f   :  { %v833_v26 = vadd.f32 %v832_v25, %v831_v24 }
 0x930   :  { %v843_v27 = vpop.xlane.xlu1 %842 }
 0x931   :  { %v834_v28 = vrot.slane %v833_v26, 2  ;;  %v844_v29 = vrot.slane %v843_v27, 4 }
 0x933   :  { %v845_v30 = vadd.f32 %v844_v29, %v843_v27  ;;  %v835_v31 = vadd.f32 %v834_v28, %v833_v26 }
 0x935   :  { %v846_v32 = vrot.slane %v845_v30, 2  ;;  %v836_v33 = vrot.slane %v835_v31, 1 }
 0x937   :  { %v847_v34 = vadd.f32 %v846_v32, %v845_v30  ;;  %v837_v35 = vadd.f32 %v836_v33, %v835_v31 }
 0x939   :  { %1112 = vpush %v837_v35  ;;  %v848_v36 = vrot.slane %v847_v34, 1 }
 0x93b   :  { %v849_v37 = vadd.f32 %v848_v36, %v847_v34 }
 0x93d   :  { %1114 = vpush %v849_v37 }
 0x96a   :  { %s1113_s5 = spop %1112 }
 0x96b   :  { %v839_v38 = vstv %s1113_s5 }
 0x96c   :  { %v854_v39 = vmul.f32 -0.5, %v839_v38 }
 0x96e   :  { %s1115_s6 = spop %1114  ;;  %v855_v41 = vmul.f32 0.125, %v854_v39 }
 0x96f   :  { %v851_v40 = vstv %s1115_s6 }
 0x970   :  { %v853_v42 = vmul.f32 0.125, %v851_v40 }
 0x972   :  { %v856_v43 = vsub.f32 %v855_v41, %v853_v42 }
 0x974   :  { %858 = vst.msk [vmem:[#allocation9] sm:$0x1] %vm857_vm7, %v856_v43 }
 0x975   :  { %1214 = shalt.err (!%p1211_p5)
}
 0x976   :  { %959 = dma.vmem_to_hbm [thread:$0]  %s957_s8, 16, %s1420_s4, [#allocation10]   ;;  %v988_v44 = vld [vmem:[#allocation7 + $0x90] ss:$0 sm:$0xff] }
 0x977   :  { %s1261_s13 = smov [#allocation8]  }
 0x978   :  { %s946_s14 = sshll.u32 %s1261_s13, 4  ;;  %s947_s14 = int_to_ptr.vmem [resolvable:$true] %s946_s14 }
 0x979   :  { %s1223_s15 = scalar_lea.vmem %s947_s14, 128  ;;  %p1228_p7 = scmp.lt.s32.totalorder %s947_s14, %s947_s14 }
 0x97a   :  { %p1224_p6 = scmp.ne.s32.totalorder %s947_s14, %s1223_s15  ;;  %p1229_p8 = scmp.lt.s32.totalorder %s1223_s15, %s1223_s15 }
 0x97c   :  { %p1230_p9 = por %p1229_p8, %p1228_p7 }
 0x97e   :  { %p1231_p10 = pnand %p1230_p9, %p1224_p6 }
 0x992   :  { %v935_v45 = vpop.f32.mrf.mxu0 }
 0x993   :  { %v936_v46 = vadd.f32 %v988_v44, %v935_v45 }
 0x994   :  { %v1111_v47 = vpop.f32.mrf.mxu0 }
 0x995   :  { %939 = vst.msk [vmem:[#allocation8] sm:$0xff] %vm80_vm2, %v936_v46 }
 0x996   :  { %1234 = shalt.err (!%p1231_p10)
}
 0x997   :  { %949 = dma.vmem_to_hbm [thread:$0]  %s947_s14, 128, %s1419_s3, [#allocation4]  }
 0x998   :  { %1247 = dma.done.wait [#allocation4], 128  }
 0x999   :  { %1248 = vsyncadd [#allocation4], 4294967168 }
 0x99a   :  { %1249 = dma.done.wait [#allocation10], 16  }
 0x99b   :  { %1250 = vsyncadd [#allocation10], 4294967280 }
 0x99c   :  { %966 = vsyncpa [#allocation3], 1 }
 0x99d   :  { %967 = vsyncpa [#allocation6], 1 }
 0x99e   :  { %968 = vsyncpa [#allocation4], 1 }
 0x99f   :  { %969 = vsyncpa [#allocation10], 1 }

</bundles_post_ra>
